<compile_context>
chip_gen: v6e
topology: v6e:2x2x1
jax: 0.10.0
libtpu: 0.0.40
codegen_flags: <defaults>
</compile_context>

<pallas_src>
import jax
import jax.numpy as jnp
from jax.experimental import pallas as pl
from jax.experimental.pallas import tpu as pltpu


def _linear_bias_kernel(x_ref, w_ref, b_ref, o_ref):
    # x_ref: (tm, Kp) lane-dense, w_ref: (Kp, Np) VMEM-resident, b_ref: (1, Np).
    acc = jnp.dot(x_ref[...], w_ref[...], preferred_element_type=jnp.float32)
    o_ref[...] = (acc + b_ref[...]).astype(o_ref.dtype)


def _pick_packed_tile(packed_rows):
    # Sized from the PADDED (128-lane) footprint so it is v7x-safe:
    #   x tile  : tm * 512 f32 = tm * 2   KiB
    #   out tile: tm * 128 f32 = tm * 0.5 KiB
    # double-buffered -> ~tm * 5 KiB; tm = 4096 -> ~20 MiB, under the 32 MiB
    # scoped-VMEM default on every generation (and v7x's 64 MiB/TC physical).
    return packed_rows if packed_rows <= 4096 else 4096


def logistic_regression_forward(x, weight, bias, *,
                                xla_fast_path_max_batch=512,
                                tm_packed=None):
    """out = x @ weight.T + bias  (nn.Linear forward).

    x: (B, F) f32, weight: (O, F) f32 (PyTorch layout), bias: (O,) f32.
    """
    B, F = x.shape
    O = weight.shape[0]

    # Small-batch fast path: kernel launch + per-step overhead exceeds the
    # data-movement time at these shapes, so let XLA handle tiny batches.
    if B <= xla_fast_path_max_batch:
        return x @ weight.T + bias

    # Pack factor: P original rows per packed row so the output is exactly
    # 128 lanes wide and the packed feature dim is a multiple of 128.
    if 128 % O == 0 and ((128 // O) * F) % 128 == 0:
        P = 128 // O
    else:
        P = 1  # TODO(synk): lane packing only implemented when O | 128 and (128/O)*F % 128 == 0.

    # Pad the batch to a multiple of the pack factor (remainder sliced off below).
    pad = (-B) % P
    xp = jnp.pad(x, ((0, pad), (0, 0))) if pad else x
    Bpad = B + pad
    packed_rows = Bpad // P
    Kp, Np = P * F, P * O

    if P > 1:
        x_packed = xp.reshape(packed_rows, Kp)            # free contiguous reshape
        eye = jnp.eye(P, dtype=weight.dtype)
        # Block-diagonal (P*F, P*O) with weight.T in each diagonal block (tiny: 256 KiB).
        w_packed = jnp.einsum("pq,fo->pfqo", eye, weight.T).reshape(Kp, Np)
        b_packed = jnp.tile(bias, P).reshape(1, Np)
    else:
        x_packed = xp
        w_packed = weight.T                                # (F, O); tiny
        b_packed = bias.reshape(1, O)

    tm = tm_packed if tm_packed is not None else _pick_packed_tile(packed_rows)
    tm = min(tm, packed_rows)
    grid = (pl.cdiv(packed_rows, tm),)

    cost = pl.CostEstimate(
        flops=2 * packed_rows * Kp * Np,
        transcendentals=0,
        bytes_accessed=4 * (packed_rows * Kp + Kp * Np + packed_rows * Np),
    )

    out_packed = pl.pallas_call(
        _linear_bias_kernel,
        out_shape=jax.ShapeDtypeStruct((packed_rows, Np), x.dtype),
        grid_spec=pltpu.PrefetchScalarGridSpec(
            num_scalar_prefetch=0,
            grid=grid,
            in_specs=[
                pl.BlockSpec((tm, Kp), lambda i: (i, 0)),   # x: strides over packed batch
                pl.BlockSpec((Kp, Np), lambda i: (0, 0)),   # weight: VMEM-resident
                pl.BlockSpec((1, Np), lambda i: (0, 0)),    # bias:   VMEM-resident
            ],
            out_specs=pl.BlockSpec((tm, Np), lambda i: (i, 0)),
        ),
        compiler_params=pltpu.CompilerParams(
            # TODO(synk): on v7x, CORE_PARALLEL / core_map would shard this axis
            # across both TensorCores; "parallel" kept for portability.
            dimension_semantics=("parallel",),
        ),
        cost_estimate=cost,
    )(x_packed, w_packed, b_packed)

    out = out_packed.reshape(Bpad, O)                      # free contiguous reshape
    return out[:B] if pad else out


if __name__ == "__main__":
    n_features, n_outputs = 32, 8

    key = jax.random.PRNGKey(0)
    kw, kb, k1, k2, k3 = jax.random.split(key, 5)

    # Deterministic init mimicking nn.Linear's uniform(-1/sqrt(F), 1/sqrt(F)).
    bound = 1.0 / jnp.sqrt(jnp.float32(n_features))
    weight = jax.random.uniform(kw, (n_outputs, n_features),
                                minval=-bound, maxval=bound, dtype=jnp.float32)
    bias = jax.random.uniform(kb, (n_outputs,),
                              minval=-bound, maxval=bound, dtype=jnp.float32)

    def check(x, out):
        ref = x @ weight.T + bias
        assert out.shape == ref.shape
        err = float(jnp.max(jnp.abs(out - ref)))
        assert jnp.allclose(out, ref, atol=1e-4, rtol=1e-4), err

    # 1) Tiny batch -> XLA fast path.
    x_small = jax.random.normal(k1, (8, n_features), dtype=jnp.float32)
    out_small = jax.block_until_ready(
        logistic_regression_forward(x_small, weight, bias))
    check(x_small, out_small)

    # 2) Pallas lane-packed path, single grid step; batch NOT a multiple of the
    #    pack factor (exercises the padding / remainder slicing).
    x_mid = jax.random.normal(k2, (2050, n_features), dtype=jnp.float32)
    out_mid = jax.block_until_ready(
        logistic_regression_forward(x_mid, weight, bias))
    check(x_mid, out_mid)

    # 3) Pallas path with a small forced tile so the grid has several steps
    #    (exercises the auto double-buffered pipeline) without huge test data.
    x_big = jax.random.normal(k3, (4096, n_features), dtype=jnp.float32)
    out_big = jax.block_until_ready(
        logistic_regression_forward(x_big, weight, bias, tm_packed=64))
    check(x_big, out_big)

    print("KERNEL_OK")
</pallas_src>

<mosaic_0001>
module attributes {stable_mosaic.version = 11 : i64} {
  func.func @_linear_bias_kernel(%arg0: i32, %arg1: memref<129x512xf32, #tpu.memory_space<vmem>>, %arg2: memref<512x128xf32, #tpu.memory_space<vmem>>, %arg3: memref<1x128xf32, #tpu.memory_space<vmem>>, %arg4: memref<129x128xf32, #tpu.memory_space<vmem>>) attributes {dimension_semantics = [#tpu.dimension_semantics<parallel>], iteration_bounds = array<i64: 1>, scalar_prefetch = 0 : i64, scratch_operands = 0 : i64, tpu.core_type = #tpu.core_type<tc>, window_params = [{transform_indices = @transform_0, window_bounds = array<i64: 129, 512>}, {pipeline_mode = #tpu.pipeline_mode<synchronous>, transform_indices = @transform_1, window_bounds = array<i64: 512, 128>}, {pipeline_mode = #tpu.pipeline_mode<synchronous>, transform_indices = @transform_2, window_bounds = array<i64: 1, 128>}, {transform_indices = @transform_3, window_bounds = array<i64: 129, 128>}]} {
    %c0 = arith.constant 0 : index
    %c0_0 = arith.constant 0 : index
    %0 = vector.load %arg1[%c0, %c0_0] : memref<129x512xf32, #tpu.memory_space<vmem>>, vector<129x512xf32>
    %c0_1 = arith.constant 0 : index
    %c0_2 = arith.constant 0 : index
    %1 = vector.load %arg2[%c0_1, %c0_2] : memref<512x128xf32, #tpu.memory_space<vmem>>, vector<512x128xf32>
    %cst = arith.constant dense<0.000000e+00> : vector<129x128xf32>
    %2 = tpu.matmul %0, %1, %cst {dimension_numbers = #tpu.dot_dimension_numbers<[1], [0], [0], [1], [0, 0, 1, 1], [], []>} : vector<129x512xf32>, vector<512x128xf32>, vector<129x128xf32> -> vector<129x128xf32>
    %c0_3 = arith.constant 0 : index
    %c0_4 = arith.constant 0 : index
    %3 = vector.load %arg3[%c0_3, %c0_4] : memref<1x128xf32, #tpu.memory_space<vmem>>, vector<1x128xf32>
    %4 = vector.broadcast %3 : vector<1x128xf32> to vector<129x128xf32>
    %5 = arith.addf %2, %4 : vector<129x128xf32>
    %c0_5 = arith.constant 0 : index
    %c0_6 = arith.constant 0 : index
    %6 = vector.load %arg4[%c0_5, %c0_6] : memref<129x128xf32, #tpu.memory_space<vmem>>, vector<129x128xf32>
    tpu.vector_store %arg4[%c0_5, %c0_6], %5 {strides = array<i32>} : memref<129x128xf32, #tpu.memory_space<vmem>>, vector<129x128xf32>,
    return
  }
  func.func @transform_0(%arg0: i32) -> (i32, i32) {
    %c0_i32 = arith.constant 0 : i32
    %c0_i32_0 = arith.constant 0 : i32
    return %arg0, %c0_i32 : i32, i32
  }
  func.func @transform_1(%arg0: i32) -> (i32, i32) {
    %c0_i32 = arith.constant 0 : i32
    %c0_i32_0 = arith.constant 0 : i32
    %c0_i32_1 = arith.constant 0 : i32
    return %c0_i32, %c0_i32_0 : i32, i32
  }
  func.func @transform_2(%arg0: i32) -> (i32, i32) {
    %c0_i32 = arith.constant 0 : i32
    %c0_i32_0 = arith.constant 0 : i32
    %c0_i32_1 = arith.constant 0 : i32
    return %c0_i32, %c0_i32_0 : i32, i32
  }
  func.func @transform_3(%arg0: i32) -> (i32, i32) {
    %c0_i32 = arith.constant 0 : i32
    %c0_i32_0 = arith.constant 0 : i32
    return %arg0, %c0_i32 : i32, i32
  }
}

</mosaic_0001>

<bundles_post_ra>
// kernel: tpu_custom_call.1
= control target key start
LH: loop header
LB: loop body
LE: loop exit
PB: predicated region body
PF: predicated region fallthrough
CT: control target
= control target key end

     0   :  { %8 = vsyncpa [#allocation3], 0  ;;  %s721_s0 = inlined_call_operand.hbm [shape: f32[129,512], index: 0, kind: input, shape index: {}]   ;;  %s722_s1 = inlined_call_operand.hbm [shape: f32[512,128], index: 1, kind: input, shape index: {}]   ;;  %s723_s2 = inlined_call_operand.vmem [shape: f32[1,128], index: 2, kind: input, shape index: {}]   ;;  %s724_s3 = inlined_call_operand.hbm [shape: f32[129,128], index: 3, kind: output, shape index: {}]  }
   0x1   :  { %9 = vsyncpa [#allocation6], 0 }
   0x2   :  { %10 = vsyncpa [#allocation4], 0  ;;  %s592_s12 = smov [#allocation2]  }
   0x3   :  { %s16_s13 = sshll.u32 %s592_s12, 4  ;;  %s17_s13 = int_to_ptr.vmem [resolvable:$true] %s16_s13 }
   0x4   :  { %s534_s14 = scalar_lea.vmem %s17_s13, 8704  ;;  %p539_p1 = scmp.lt.s32.totalorder %s17_s13, %s17_s13 }
   0x5   :  { %p535_p0 = scmp.ne.s32.totalorder %s17_s13, %s534_s14  ;;  %p540_p2 = scmp.lt.s32.totalorder %s534_s14, %s534_s14 }
   0x7   :  { %p541_p3 = por %p540_p2, %p539_p1 }
   0x9   :  { %p542_p4 = pnand %p541_p3, %p535_p0 }
   0xb   :  { %545 = shalt.err (!%p542_p4)
}
   0xc   :  { %s593_s15 = smov 512   ;;  %s594_s16 = smov 32  }
   0xd   :  { %22 = dma.hbm_to_vmem [thread:$0]  %s721_s0, 8704, %s17_s13, [#allocation3], %s593_s15, %s593_s15, %s594_s16  }
   0xe   :  { %s595_s19 = smov [#allocation5]  }
   0xf   :  { %s28_s20 = sshll.u32 %s595_s19, 4  ;;  %s29_s20 = int_to_ptr.vmem [resolvable:$true] %s28_s20 }
  0x10   :  { %s554_s21 = scalar_lea.vmem %s29_s20, 8192  ;;  %p559_p6 = scmp.lt.s32.totalorder %s29_s20, %s29_s20 }
  0x11   :  { %p555_p5 = scmp.ne.s32.totalorder %s29_s20, %s554_s21  ;;  %p560_p7 = scmp.lt.s32.totalorder %s554_s21, %s554_s21 }
  0x13   :  { %p561_p8 = por %p560_p7, %p559_p6 }
  0x15   :  { %p562_p9 = pnand %p561_p8, %p555_p5 }
  0x17   :  { %565 = shalt.err (!%p562_p9)
}
  0x18   :  { %s596_s22 = smov 128   ;;  %s597_s23 = smov 8  }
  0x19   :  { %34 = dma.hbm_to_vmem [thread:$0]  %s722_s1, 8192, %s29_s20, [#allocation6], %s596_s22, %s596_s22, %s597_s23  }
  0x1a   :  { %586 = dma.done.wait [#allocation3], 8704  }
  0x1b   :  { %587 = vsyncadd [#allocation3], 4294958592 }
  0x1c   :  { %588 = dma.done.wait [#allocation6], 8192  }
  0x1d   :  { %589 = vsyncadd [#allocation6], 4294959104  ;;  %v598_v0 = vmov 0.0   ;;  %v126_v1 = vld [vmem:[#allocation5 + $0x78] sm:$0xff]  ;;  %v125_v3 = vld [vmem:[#allocation5 + $0x70] sm:$0xff] }
  0x1e   :  { %182 = vmatprep.subr.mxu0 %v598_v0  ;;  %332 = vmatprep.subr.mxu1 %v598_v0  ;;  %v158_v2 = vld [vmem:[#allocation5 + $0x178] sm:$0xff]  ;;  %v157_v4 = vld [vmem:[#allocation5 + $0x170] sm:$0xff]  ;;  %v124_v5 = vld [vmem:[#allocation5 + $0x68] sm:$0xff] }
  0x1f   :  { %183 = vmatpush1.msra.mxu0 %v126_v1  ;;  %333 = vmatpush1.msra.mxu1 %v158_v2  ;;  %v156_v6 = vld [vmem:[#allocation5 + $0x168] sm:$0xff]  ;;  %v123_v7 = vld [vmem:[#allocation5 + $0x60] sm:$0xff]  ;;  %v122_v9 = vld [vmem:[#allocation5 + $0x58] sm:$0xff] }
  0x20   :  { %184 = vmatprep.subr.mxu0 %v598_v0  ;;  %334 = vmatprep.subr.mxu1 %v598_v0  ;;  %v155_v8 = vld [vmem:[#allocation5 + $0x160] sm:$0xff]  ;;  %v154_v10 = vld [vmem:[#allocation5 + $0x158] sm:$0xff]  ;;  %v121_v11 = vld [vmem:[#allocation5 + $0x50] sm:$0xff] }
  0x21   :  { %185 = vmatpush1.msra.mxu0 %v125_v3  ;;  %335 = vmatpush1.msra.mxu1 %v157_v4  ;;  %v153_v12 = vld [vmem:[#allocation5 + $0x150] sm:$0xff]  ;;  %v120_v13 = vld [vmem:[#allocation5 + $0x48] sm:$0xff]  ;;  %v119_v15 = vld [vmem:[#allocation5 + $0x40] sm:$0xff] }
  0x22   :  { %186 = vmatprep.subr.mxu0 %v598_v0  ;;  %336 = vmatprep.subr.mxu1 %v598_v0  ;;  %v152_v14 = vld [vmem:[#allocation5 + $0x148] sm:$0xff]  ;;  %v151_v16 = vld [vmem:[#allocation5 + $0x140] sm:$0xff]  ;;  %v118_v17 = vld [vmem:[#allocation5 + $0x38] sm:$0xff] }
  0x23   :  { %187 = vmatpush1.msra.mxu0 %v124_v5  ;;  %337 = vmatpush1.msra.mxu1 %v156_v6  ;;  %v150_v18 = vld [vmem:[#allocation5 + $0x138] sm:$0xff]  ;;  %v117_v19 = vld [vmem:[#allocation5 + $0x30] sm:$0xff]  ;;  %v116_v21 = vld [vmem:[#allocation5 + $0x28] sm:$0xff] }
  0x24   :  { %188 = vmatprep.subr.mxu0 %v598_v0  ;;  %338 = vmatprep.subr.mxu1 %v598_v0  ;;  %v149_v20 = vld [vmem:[#allocation5 + $0x130] sm:$0xff]  ;;  %v148_v22 = vld [vmem:[#allocation5 + $0x128] sm:$0xff]  ;;  %v115_v23 = vld [vmem:[#allocation5 + $0x20] sm:$0xff] }
  0x25   :  { %189 = vmatpush1.msra.mxu0 %v123_v7  ;;  %339 = vmatpush1.msra.mxu1 %v155_v8  ;;  %v147_v24 = vld [vmem:[#allocation5 + $0x120] sm:$0xff]  ;;  %v114_v25 = vld [vmem:[#allocation5 + $0x18] sm:$0xff]  ;;  %v113_v27 = vld [vmem:[#allocation5 + $0x10] sm:$0xff] }
  0x26   :  { %190 = vmatprep.subr.mxu0 %v598_v0  ;;  %340 = vmatprep.subr.mxu1 %v598_v0  ;;  %v146_v26 = vld [vmem:[#allocation5 + $0x118] sm:$0xff]  ;;  %v145_v28 = vld [vmem:[#allocation5 + $0x110] sm:$0xff]  ;;  %v112_v29 = vld [vmem:[#allocation5 + $0x8] sm:$0xff] }
  0x27   :  { %191 = vmatpush1.msra.mxu0 %v122_v9  ;;  %341 = vmatpush1.msra.mxu1 %v154_v10  ;;  %v144_v30 = vld [vmem:[#allocation5 + $0x108] sm:$0xff]  ;;  %v111_v31 = vld [vmem:[#allocation5] sm:$0xff]  ;;  %v142_v33 = vld [vmem:[#allocation5 + $0xf8] sm:$0xff] }
  0x28   :  { %192 = vmatprep.subr.mxu0 %v598_v0  ;;  %342 = vmatprep.subr.mxu1 %v598_v0  ;;  %v143_v32 = vld [vmem:[#allocation5 + $0x100] sm:$0xff]  ;;  %v174_v34 = vld [vmem:[#allocation5 + $0x1f8] sm:$0xff]  ;;  %v141_v35 = vld [vmem:[#allocation5 + $0xf0] sm:$0xff] }
  0x29   :  { %193 = vmatpush1.msra.mxu0 %v121_v11  ;;  %343 = vmatpush1.msra.mxu1 %v153_v12  ;;  %v173_v36 = vld [vmem:[#allocation5 + $0x1f0] sm:$0xff]  ;;  %v140_v37 = vld [vmem:[#allocation5 + $0xe8] sm:$0xff]  ;;  %v139_v39 = vld [vmem:[#allocation5 + $0xe0] sm:$0xff] }
  0x2a   :  { %194 = vmatprep.subr.mxu0 %v598_v0  ;;  %344 = vmatprep.subr.mxu1 %v598_v0  ;;  %v172_v38 = vld [vmem:[#allocation5 + $0x1e8] sm:$0xff]  ;;  %v171_v40 = vld [vmem:[#allocation5 + $0x1e0] sm:$0xff]  ;;  %v138_v41 = vld [vmem:[#allocation5 + $0xd8] sm:$0xff] }
  0x2b   :  { %195 = vmatpush1.msra.mxu0 %v120_v13  ;;  %345 = vmatpush1.msra.mxu1 %v152_v14  ;;  %v170_v42 = vld [vmem:[#allocation5 + $0x1d8] sm:$0xff]  ;;  %v137_v43 = vld [vmem:[#allocation5 + $0xd0] sm:$0xff]  ;;  %v136_v45 = vld [vmem:[#allocation5 + $0xc8] sm:$0xff] }
  0x2c   :  { %196 = vmatprep.subr.mxu0 %v598_v0  ;;  %346 = vmatprep.subr.mxu1 %v598_v0  ;;  %v169_v44 = vld [vmem:[#allocation5 + $0x1d0] sm:$0xff]  ;;  %v168_v46 = vld [vmem:[#allocation5 + $0x1c8] sm:$0xff]  ;;  %v135_v47 = vld [vmem:[#allocation5 + $0xc0] sm:$0xff] }
  0x2d   :  { %197 = vmatpush1.msra.mxu0 %v119_v15  ;;  %347 = vmatpush1.msra.mxu1 %v151_v16  ;;  %v167_v48 = vld [vmem:[#allocation5 + $0x1c0] sm:$0xff]  ;;  %v134_v49 = vld [vmem:[#allocation5 + $0xb8] sm:$0xff]  ;;  %v133_v51 = vld [vmem:[#allocation5 + $0xb0] sm:$0xff] }
  0x2e   :  { %198 = vmatprep.subr.mxu0 %v598_v0  ;;  %348 = vmatprep.subr.mxu1 %v598_v0  ;;  %v166_v50 = vld [vmem:[#allocation5 + $0x1b8] sm:$0xff]  ;;  %v165_v52 = vld [vmem:[#allocation5 + $0x1b0] sm:$0xff]  ;;  %v132_v53 = vld [vmem:[#allocation5 + $0xa8] sm:$0xff] }
  0x2f   :  { %199 = vmatpush1.msra.mxu0 %v118_v17  ;;  %349 = vmatpush1.msra.mxu1 %v150_v18  ;;  %v164_v54 = vld [vmem:[#allocation5 + $0x1a8] sm:$0xff]  ;;  %v131_v55 = vld [vmem:[#allocation5 + $0xa0] sm:$0xff]  ;;  %v130_v57 = vld [vmem:[#allocation5 + $0x98] sm:$0xff] }
  0x30   :  { %200 = vmatprep.subr.mxu0 %v598_v0  ;;  %350 = vmatprep.subr.mxu1 %v598_v0  ;;  %v163_v56 = vld [vmem:[#allocation5 + $0x1a0] sm:$0xff]  ;;  %v162_v58 = vld [vmem:[#allocation5 + $0x198] sm:$0xff]  ;;  %v129_v59 = vld [vmem:[#allocation5 + $0x90] sm:$0xff] }
  0x31   :  { %201 = vmatpush1.msra.mxu0 %v117_v19  ;;  %351 = vmatpush1.msra.mxu1 %v149_v20  ;;  %v161_v60 = vld [vmem:[#allocation5 + $0x190] sm:$0xff]  ;;  %v128_v61 = vld [vmem:[#allocation5 + $0x88] sm:$0xff]  ;;  %v127_v63 = vld [vmem:[#allocation5 + $0x80] sm:$0xff] }
  0x32   :  { %202 = vmatprep.subr.mxu0 %v598_v0  ;;  %352 = vmatprep.subr.mxu1 %v598_v0  ;;  %v160_v62 = vld [vmem:[#allocation5 + $0x188] sm:$0xff]  ;;  %v159_v2 = vld [vmem:[#allocation5 + $0x180] sm:$0xff]  ;;  %v46_v3 = vld [vmem:[#allocation2 + $0x18] sm:$0xff] }
  0x33   :  { %203 = vmatpush1.msra.mxu0 %v116_v21  ;;  %353 = vmatpush1.msra.mxu1 %v148_v22  ;;  %v44_v1 = vld [vmem:[#allocation2 + $0x8] sm:$0xff]  ;;  %v43_v4 = vld [vmem:[#allocation2] sm:$0xff]  ;;  %v45_v5 = vld [vmem:[#allocation2 + $0x10] sm:$0xff] }
  0x34   :  { %204 = vmatprep.subr.mxu0 %v598_v0  ;;  %354 = vmatprep.subr.mxu1 %v598_v0  ;;  %v48_v6 = vld [vmem:[#allocation2 + $0x28] sm:$0xff]  ;;  %v50_v7 = vld [vmem:[#allocation2 + $0x38] sm:$0xff]  ;;  %v47_v8 = vld [vmem:[#allocation2 + $0x20] sm:$0xff] }
  0x35   :  { %205 = vmatpush1.msra.mxu0 %v115_v23  ;;  %355 = vmatpush1.msra.mxu1 %v147_v24  ;;  %v49_v9 = vld [vmem:[#allocation2 + $0x30] sm:$0xff]  ;;  %v52_v10 = vld [vmem:[#allocation2 + $0x48] sm:$0xff]  ;;  %v54_v11 = vld [vmem:[#allocation2 + $0x58] sm:$0xff] }
  0x36   :  { %206 = vmatprep.subr.mxu0 %v598_v0  ;;  %356 = vmatprep.subr.mxu1 %v598_v0  ;;  %v53_v12 = vld [vmem:[#allocation2 + $0x50] sm:$0xff]  ;;  %v56_v13 = vld [vmem:[#allocation2 + $0x68] sm:$0xff]  ;;  %v58_v14 = vld [vmem:[#allocation2 + $0x78] sm:$0xff] }
  0x37   :  { %207 = vmatpush1.msra.mxu0 %v114_v25  ;;  %357 = vmatpush1.msra.mxu1 %v146_v26  ;;  %v55_v15 = vld [vmem:[#allocation2 + $0x60] sm:$0xff]  ;;  %v57_v16 = vld [vmem:[#allocation2 + $0x70] sm:$0xff]  ;;  %v60_v17 = vld [vmem:[#allocation2 + $0x88] sm:$0xff] }
  0x38   :  { %208 = vmatprep.subr.mxu0 %v598_v0  ;;  %358 = vmatprep.subr.mxu1 %v598_v0  ;;  %v62_v18 = vld [vmem:[#allocation2 + $0x98] sm:$0xff]  ;;  %v59_v19 = vld [vmem:[#allocation2 + $0x80] sm:$0xff]  ;;  %v61_v20 = vld [vmem:[#allocation2 + $0x90] sm:$0xff] }
  0x39   :  { %209 = vmatpush1.msra.mxu0 %v113_v27  ;;  %359 = vmatpush1.msra.mxu1 %v145_v28  ;;  %v64_v21 = vld [vmem:[#allocation2 + $0xa8] sm:$0xff]  ;;  %v66_v22 = vld [vmem:[#allocation2 + $0xb8] sm:$0xff]  ;;  %v63_v23 = vld [vmem:[#allocation2 + $0xa0] sm:$0xff] }
  0x3a   :  { %210 = vmatprep.subr.mxu0 %v598_v0  ;;  %360 = vmatprep.subr.mxu1 %v598_v0  ;;  %v65_v24 = vld [vmem:[#allocation2 + $0xb0] sm:$0xff]  ;;  %v68_v25 = vld [vmem:[#allocation2 + $0xc8] sm:$0xff]  ;;  %v70_v26 = vld [vmem:[#allocation2 + $0xd8] sm:$0xff] }
  0x3b   :  { %211 = vmatpush1.msra.mxu0 %v112_v29  ;;  %361 = vmatpush1.msra.mxu1 %v144_v30  ;;  %v67_v27 = vld [vmem:[#allocation2 + $0xc0] sm:$0xff]  ;;  %v69_v28 = vld [vmem:[#allocation2 + $0xd0] sm:$0xff]  ;;  %v72_v29 = vld [vmem:[#allocation2 + $0xe8] sm:$0xff] }
  0x3c   :  { %212 = vmatprep.subr.mxu0 %v598_v0  ;;  %362 = vmatprep.subr.mxu1 %v598_v0  ;;  %v74_v30 = vld [vmem:[#allocation2 + $0xf8] sm:$0xff] }
  0x3d   :  { %213 = vmatpush1.msra.mxu0 %v111_v31  ;;  %363 = vmatpush1.msra.mxu1 %v143_v32  ;;  %v71_v31 = vld [vmem:[#allocation2 + $0xe0] sm:$0xff]  ;;  %v73_v32 = vld [vmem:[#allocation2 + $0xf0] sm:$0xff] }
  0x3e   :  { %214 = vmatprep.subr.mxu0 %v598_v0  ;;  %364 = vmatprep.subr.mxu1 %v598_v0 }
  0x3f   :  { %215 = vmatpush2.msra.mxu0 %v142_v33  ;;  %365 = vmatpush2.msra.mxu1 %v174_v34  ;;  %v76_v33 = vld [vmem:[#allocation2 + $0x108] sm:$0xff]  ;;  %v78_v34 = vld [vmem:[#allocation2 + $0x118] sm:$0xff] }
  0x40   :  { %216 = vmatprep.subr.mxu0 %v598_v0  ;;  %366 = vmatprep.subr.mxu1 %v598_v0 }
  0x41   :  { %217 = vmatpush2.msra.mxu0 %v141_v35  ;;  %367 = vmatpush2.msra.mxu1 %v173_v36  ;;  %v75_v35 = vld [vmem:[#allocation2 + $0x100] sm:$0xff]  ;;  %v77_v36 = vld [vmem:[#allocation2 + $0x110] sm:$0xff] }
  0x42   :  { %218 = vmatprep.subr.mxu0 %v598_v0  ;;  %368 = vmatprep.subr.mxu1 %v598_v0 }
  0x43   :  { %219 = vmatpush2.msra.mxu0 %v140_v37  ;;  %369 = vmatpush2.msra.mxu1 %v172_v38  ;;  %v80_v37 = vld [vmem:[#allocation2 + $0x128] sm:$0xff]  ;;  %v82_v38 = vld [vmem:[#allocation2 + $0x138] sm:$0xff] }
  0x44   :  { %220 = vmatprep.subr.mxu0 %v598_v0  ;;  %370 = vmatprep.subr.mxu1 %v598_v0 }
  0x45   :  { %221 = vmatpush2.msra.mxu0 %v139_v39  ;;  %371 = vmatpush2.msra.mxu1 %v171_v40  ;;  %v79_v39 = vld [vmem:[#allocation2 + $0x120] sm:$0xff]  ;;  %v81_v40 = vld [vmem:[#allocation2 + $0x130] sm:$0xff] }
  0x46   :  { %222 = vmatprep.subr.mxu0 %v598_v0  ;;  %372 = vmatprep.subr.mxu1 %v598_v0 }
  0x47   :  { %223 = vmatpush2.msra.mxu0 %v138_v41  ;;  %373 = vmatpush2.msra.mxu1 %v170_v42  ;;  %v84_v41 = vld [vmem:[#allocation2 + $0x148] sm:$0xff]  ;;  %v86_v42 = vld [vmem:[#allocation2 + $0x158] sm:$0xff] }
  0x48   :  { %224 = vmatprep.subr.mxu0 %v598_v0  ;;  %374 = vmatprep.subr.mxu1 %v598_v0 }
  0x49   :  { %225 = vmatpush2.msra.mxu0 %v137_v43  ;;  %375 = vmatpush2.msra.mxu1 %v169_v44  ;;  %v83_v43 = vld [vmem:[#allocation2 + $0x140] sm:$0xff]  ;;  %v85_v44 = vld [vmem:[#allocation2 + $0x150] sm:$0xff] }
  0x4a   :  { %226 = vmatprep.subr.mxu0 %v598_v0  ;;  %376 = vmatprep.subr.mxu1 %v598_v0 }
  0x4b   :  { %227 = vmatpush2.msra.mxu0 %v136_v45  ;;  %377 = vmatpush2.msra.mxu1 %v168_v46  ;;  %v88_v45 = vld [vmem:[#allocation2 + $0x168] sm:$0xff]  ;;  %v90_v46 = vld [vmem:[#allocation2 + $0x178] sm:$0xff] }
  0x4c   :  { %228 = vmatprep.subr.mxu0 %v598_v0  ;;  %378 = vmatprep.subr.mxu1 %v598_v0 }
  0x4d   :  { %229 = vmatpush2.msra.mxu0 %v135_v47  ;;  %379 = vmatpush2.msra.mxu1 %v167_v48  ;;  %v87_v47 = vld [vmem:[#allocation2 + $0x160] sm:$0xff]  ;;  %v89_v48 = vld [vmem:[#allocation2 + $0x170] sm:$0xff] }
  0x4e   :  { %230 = vmatprep.subr.mxu0 %v598_v0  ;;  %380 = vmatprep.subr.mxu1 %v598_v0 }
  0x4f   :  { %231 = vmatpush2.msra.mxu0 %v134_v49  ;;  %381 = vmatpush2.msra.mxu1 %v166_v50  ;;  %v92_v49 = vld [vmem:[#allocation2 + $0x188] sm:$0xff]  ;;  %v94_v50 = vld [vmem:[#allocation2 + $0x198] sm:$0xff] }
  0x50   :  { %232 = vmatprep.subr.mxu0 %v598_v0  ;;  %382 = vmatprep.subr.mxu1 %v598_v0 }
  0x51   :  { %233 = vmatpush2.msra.mxu0 %v133_v51  ;;  %383 = vmatpush2.msra.mxu1 %v165_v52  ;;  %v91_v51 = vld [vmem:[#allocation2 + $0x180] sm:$0xff]  ;;  %v93_v52 = vld [vmem:[#allocation2 + $0x190] sm:$0xff] }
  0x52   :  { %234 = vmatprep.subr.mxu0 %v598_v0  ;;  %384 = vmatprep.subr.mxu1 %v598_v0 }
  0x53   :  { %235 = vmatpush2.msra.mxu0 %v132_v53  ;;  %385 = vmatpush2.msra.mxu1 %v164_v54  ;;  %v96_v53 = vld [vmem:[#allocation2 + $0x1a8] sm:$0xff]  ;;  %v98_v54 = vld [vmem:[#allocation2 + $0x1b8] sm:$0xff] }
  0x54   :  { %236 = vmatprep.subr.mxu0 %v598_v0  ;;  %386 = vmatprep.subr.mxu1 %v598_v0 }
  0x55   :  { %237 = vmatpush2.msra.mxu0 %v131_v55  ;;  %387 = vmatpush2.msra.mxu1 %v163_v56  ;;  %v95_v55 = vld [vmem:[#allocation2 + $0x1a0] sm:$0xff]  ;;  %v97_v56 = vld [vmem:[#allocation2 + $0x1b0] sm:$0xff] }
  0x56   :  { %238 = vmatprep.subr.mxu0 %v598_v0  ;;  %388 = vmatprep.subr.mxu1 %v598_v0 }
  0x57   :  { %239 = vmatpush2.msra.mxu0 %v130_v57  ;;  %389 = vmatpush2.msra.mxu1 %v162_v58  ;;  %v100_v57 = vld [vmem:[#allocation2 + $0x1c8] sm:$0xff]  ;;  %v102_v58 = vld [vmem:[#allocation2 + $0x1d8] sm:$0xff] }
  0x58   :  { %240 = vmatprep.subr.mxu0 %v598_v0  ;;  %390 = vmatprep.subr.mxu1 %v598_v0 }
  0x59   :  { %241 = vmatpush2.msra.mxu0 %v129_v59  ;;  %391 = vmatpush2.msra.mxu1 %v161_v60  ;;  %v99_v59 = vld [vmem:[#allocation2 + $0x1c0] sm:$0xff]  ;;  %v101_v60 = vld [vmem:[#allocation2 + $0x1d0] sm:$0xff] }
  0x5a   :  { %242 = vmatprep.subr.mxu0 %v598_v0  ;;  %392 = vmatprep.subr.mxu1 %v598_v0 }
  0x5b   :  { %243 = vmatpush2.msra.mxu0 %v128_v61  ;;  %393 = vmatpush2.msra.mxu1 %v160_v62  ;;  %v104_v61 = vld [vmem:[#allocation2 + $0x1e8] sm:$0xff]  ;;  %v106_v62 = vld [vmem:[#allocation2 + $0x1f8] sm:$0xff] }
  0x5c   :  { %244 = vmatprep.subr.mxu0 %v598_v0  ;;  %394 = vmatprep.subr.mxu1 %v598_v0  ;;  %v51_v0 = vld [vmem:[#allocation2 + $0x40] sm:$0xff] }
  0x5d   :  { %245 = vmatpush2.msra.mxu0 %v127_v63  ;;  %246 = vmatprep.mubr.f32.mxu0 %v44_v1  ;;  %v103_v63 = vld [vmem:[#allocation2 + $0x1e0] sm:$0xff]  ;;  %v105_v1 = vld [vmem:[#allocation2 + $0x1f0] sm:$0xff] }
  0x5e   :  { %395 = vmatpush2.msra.mxu1 %v159_v2  ;;  %396 = vmatprep.mubr.f32.mxu1 %v46_v3  ;;  %v108_v2 = vld [vmem:[#allocation2 + $0x208] sm:$0x1]  ;;  %v110_v3 = vld [vmem:[#allocation2 + $0x218] sm:$0x1] }
  0x5f   :  { %247 = vmatmul.mubr.f32.vlgmr.msra.gmra.mxu0 %v43_v4  ;;  %397 = vmatmul.mubr.f32.vlgmr.msra.gmra.mxu1 %v45_v5  ;;  %v107_v4 = vld [vmem:[#allocation2 + $0x200] sm:$0x1]  ;;  %v109_v5 = vld [vmem:[#allocation2 + $0x210] sm:$0x1] }
  0x60   :  { %251 = vmatprep.mubr.f32.mxu0 %v48_v6  ;;  %401 = vmatprep.mubr.f32.mxu1 %v50_v7  ;;  %v696_v6 = vld [vmem:[%s723_s2] ss:$0 sm:$0xff]  ;;  %s599_s2 = smov [#allocation7]  }
  0x61   :  { %s504_s26 = sshll.u32 %s599_s2, 4  ;;  %s505_s26 = int_to_ptr.vmem [resolvable:$true] %s504_s26 }
  0x62   :  { %s566_s27 = scalar_lea.vmem %s505_s26, 2176  ;;  %p571_p11 = scmp.lt.s32.totalorder %s505_s26, %s505_s26 }
  0x63   :  { %252 = vmatmul.mubr.f32.gmra.mxu0 %v47_v8  ;;  %402 = vmatmul.mubr.f32.gmra.mxu1 %v49_v9  ;;  %p567_p10 = scmp.ne.s32.totalorder %s505_s26, %s566_s27  ;;  %p572_p12 = scmp.lt.s32.totalorder %s566_s27, %s566_s27 }
  0x64   :  { %256 = vmatprep.mubr.f32.mxu0 %v52_v10  ;;  %406 = vmatprep.mubr.f32.mxu1 %v54_v11 }
  0x65   :  { %p573_p13 = por %p572_p12, %p571_p11 }
  0x67   :  { %257 = vmatmul.mubr.f32.gmra.mxu0 %v51_v0  ;;  %407 = vmatmul.mubr.f32.gmra.mxu1 %v53_v12  ;;  %p574_p0 = pnand %p573_p13, %p567_p10 }
  0x68   :  { %261 = vmatprep.mubr.f32.mxu0 %v56_v13  ;;  %411 = vmatprep.mubr.f32.mxu1 %v58_v14 }
  0x6b   :  { %262 = vmatmul.mubr.f32.gmra.mxu0 %v55_v15  ;;  %412 = vmatmul.mubr.f32.gmra.mxu1 %v57_v16 }
  0x6c   :  { %266 = vmatprep.mubr.f32.mxu0 %v60_v17  ;;  %416 = vmatprep.mubr.f32.mxu1 %v62_v18 }
  0x6f   :  { %267 = vmatmul.mubr.f32.gmra.mxu0 %v59_v19  ;;  %417 = vmatmul.mubr.f32.gmra.mxu1 %v61_v20 }
  0x70   :  { %271 = vmatprep.mubr.f32.mxu0 %v64_v21  ;;  %421 = vmatprep.mubr.f32.mxu1 %v66_v22 }
  0x73   :  { %272 = vmatmul.mubr.f32.gmra.mxu0 %v63_v23  ;;  %422 = vmatmul.mubr.f32.gmra.mxu1 %v65_v24 }
  0x74   :  { %276 = vmatprep.mubr.f32.mxu0 %v68_v25  ;;  %426 = vmatprep.mubr.f32.mxu1 %v70_v26 }
  0x77   :  { %277 = vmatmul.mubr.f32.gmra.mxu0 %v67_v27  ;;  %427 = vmatmul.mubr.f32.gmra.mxu1 %v69_v28 }
  0x78   :  { %281 = vmatprep.mubr.f32.mxu0 %v72_v29  ;;  %431 = vmatprep.mubr.f32.mxu1 %v74_v30 }
  0x7b   :  { %282 = vmatmul.mubr.f32.gmra.mxu0 %v71_v31  ;;  %432 = vmatmul.mubr.f32.gmra.mxu1 %v73_v32 }
  0x7c   :  { %286 = vmatprep.mubr.f32.mxu0 %v76_v33  ;;  %436 = vmatprep.mubr.f32.mxu1 %v78_v34 }
  0x7f   :  { %287 = vmatmul.mubr.f32.gmra.mxu0 %v75_v35  ;;  %437 = vmatmul.mubr.f32.gmra.mxu1 %v77_v36 }
  0x80   :  { %291 = vmatprep.mubr.f32.mxu0 %v80_v37  ;;  %441 = vmatprep.mubr.f32.mxu1 %v82_v38 }
  0x83   :  { %292 = vmatmul.mubr.f32.gmra.mxu0 %v79_v39  ;;  %442 = vmatmul.mubr.f32.gmra.mxu1 %v81_v40 }
  0x84   :  { %296 = vmatprep.mubr.f32.mxu0 %v84_v41  ;;  %446 = vmatprep.mubr.f32.mxu1 %v86_v42 }
  0x87   :  { %297 = vmatmul.mubr.f32.gmra.mxu0 %v83_v43  ;;  %447 = vmatmul.mubr.f32.gmra.mxu1 %v85_v44 }
  0x88   :  { %301 = vmatprep.mubr.f32.mxu0 %v88_v45  ;;  %451 = vmatprep.mubr.f32.mxu1 %v90_v46 }
  0x8b   :  { %302 = vmatmul.mubr.f32.gmra.mxu0 %v87_v47  ;;  %452 = vmatmul.mubr.f32.gmra.mxu1 %v89_v48 }
  0x8c   :  { %306 = vmatprep.mubr.f32.mxu0 %v92_v49  ;;  %456 = vmatprep.mubr.f32.mxu1 %v94_v50 }
  0x8f   :  { %307 = vmatmul.mubr.f32.gmra.mxu0 %v91_v51  ;;  %457 = vmatmul.mubr.f32.gmra.mxu1 %v93_v52 }
  0x90   :  { %311 = vmatprep.mubr.f32.mxu0 %v96_v53  ;;  %461 = vmatprep.mubr.f32.mxu1 %v98_v54 }
  0x93   :  { %312 = vmatmul.mubr.f32.gmra.mxu0 %v95_v55  ;;  %462 = vmatmul.mubr.f32.gmra.mxu1 %v97_v56 }
  0x94   :  { %316 = vmatprep.mubr.f32.mxu0 %v100_v57  ;;  %466 = vmatprep.mubr.f32.mxu1 %v102_v58 }
  0x97   :  { %317 = vmatmul.mubr.f32.gmra.mxu0 %v99_v59  ;;  %467 = vmatmul.mubr.f32.gmra.mxu1 %v101_v60 }
  0x98   :  { %321 = vmatprep.mubr.f32.mxu0 %v104_v61  ;;  %471 = vmatprep.mubr.f32.mxu1 %v106_v62 }
  0x9b   :  { %322 = vmatmul.mubr.f32.gmra.mxu0 %v103_v63  ;;  %472 = vmatmul.mubr.f32.gmra.mxu1 %v105_v1 }
  0x9c   :  { %326 = vmatprep.mubr.f32.mxu0 %v108_v2  ;;  %476 = vmatprep.mubr.f32.mxu1 %v110_v3 }
  0x9f   :  { %327 = vmatmul.mubr.f32.gmra.mxu0 %v107_v4  ;;  %477 = vmatmul.mubr.f32.gmra.mxu1 %v109_v5 }
 0x11f   :  { %v248_v7 = vpop.f32.mrf.mxu0  ;;  %v398_v8 = vpop.f32.mrf.mxu1 }
 0x120   :  { %v249_v9 = vadd.f32 %v696_v6, %v248_v7 }
 0x121   :  { %v250_v10 = vpop.f32.mrf.mxu0  ;;  %v400_v11 = vpop.f32.mrf.mxu1 }
 0x122   :  { %v399_v0 = vadd.f32 %v398_v8, %v249_v9 }
 0x123   :  { %v253_v12 = vpop.f32.mrf.mxu0  ;;  %v403_v13 = vpop.f32.mrf.mxu1 }
 0x124   :  { %482 = vst [vmem:[#allocation7] sm:$0xff] %v399_v0  ;;  %v254_v14 = vadd.f32 %v696_v6, %v253_v12 }
 0x125   :  { %v255_v15 = vpop.f32.mrf.mxu0  ;;  %v405_v16 = vpop.f32.mrf.mxu1 }
 0x126   :  { %v404_v17 = vadd.f32 %v403_v13, %v254_v14 }
 0x127   :  { %v258_v18 = vpop.f32.mrf.mxu0  ;;  %v408_v19 = vpop.f32.mrf.mxu1 }
 0x128   :  { %483 = vst [vmem:[#allocation7 + $0x8] sm:$0xff] %v404_v17  ;;  %v259_v20 = vadd.f32 %v696_v6, %v258_v18 }
 0x129   :  { %v260_v21 = vpop.f32.mrf.mxu0  ;;  %v410_v22 = vpop.f32.mrf.mxu1 }
 0x12a   :  { %v409_v23 = vadd.f32 %v408_v19, %v259_v20 }
 0x12b   :  { %v263_v24 = vpop.f32.mrf.mxu0  ;;  %v413_v25 = vpop.f32.mrf.mxu1 }
 0x12c   :  { %484 = vst [vmem:[#allocation7 + $0x10] sm:$0xff] %v409_v23  ;;  %v264_v26 = vadd.f32 %v696_v6, %v263_v24 }
 0x12d   :  { %v265_v27 = vpop.f32.mrf.mxu0  ;;  %v415_v28 = vpop.f32.mrf.mxu1 }
 0x12e   :  { %v414_v29 = vadd.f32 %v413_v25, %v264_v26 }
 0x12f   :  { %v268_v30 = vpop.f32.mrf.mxu0  ;;  %v418_v31 = vpop.f32.mrf.mxu1 }
 0x130   :  { %485 = vst [vmem:[#allocation7 + $0x18] sm:$0xff] %v414_v29  ;;  %v269_v32 = vadd.f32 %v696_v6, %v268_v30 }
 0x131   :  { %v270_v33 = vpop.f32.mrf.mxu0  ;;  %v420_v34 = vpop.f32.mrf.mxu1 }
 0x132   :  { %v419_v35 = vadd.f32 %v418_v31, %v269_v32 }
 0x133   :  { %v273_v36 = vpop.f32.mrf.mxu0  ;;  %v423_v37 = vpop.f32.mrf.mxu1 }
 0x134   :  { %486 = vst [vmem:[#allocation7 + $0x20] sm:$0xff] %v419_v35  ;;  %v274_v38 = vadd.f32 %v696_v6, %v273_v36 }
 0x135   :  { %v275_v39 = vpop.f32.mrf.mxu0  ;;  %v425_v40 = vpop.f32.mrf.mxu1 }
 0x136   :  { %v424_v41 = vadd.f32 %v423_v37, %v274_v38 }
 0x137   :  { %v278_v42 = vpop.f32.mrf.mxu0  ;;  %v428_v43 = vpop.f32.mrf.mxu1 }
 0x138   :  { %487 = vst [vmem:[#allocation7 + $0x28] sm:$0xff] %v424_v41  ;;  %v279_v44 = vadd.f32 %v696_v6, %v278_v42 }
 0x139   :  { %v280_v45 = vpop.f32.mrf.mxu0  ;;  %v430_v46 = vpop.f32.mrf.mxu1 }
 0x13a   :  { %v429_v47 = vadd.f32 %v428_v43, %v279_v44 }
 0x13b   :  { %v283_v48 = vpop.f32.mrf.mxu0  ;;  %v433_v49 = vpop.f32.mrf.mxu1 }
 0x13c   :  { %488 = vst [vmem:[#allocation7 + $0x30] sm:$0xff] %v429_v47  ;;  %v284_v50 = vadd.f32 %v696_v6, %v283_v48 }
 0x13d   :  { %v285_v51 = vpop.f32.mrf.mxu0  ;;  %v435_v52 = vpop.f32.mrf.mxu1 }
 0x13e   :  { %v434_v53 = vadd.f32 %v433_v49, %v284_v50 }
 0x13f   :  { %v288_v54 = vpop.f32.mrf.mxu0  ;;  %v438_v55 = vpop.f32.mrf.mxu1 }
 0x140   :  { %489 = vst [vmem:[#allocation7 + $0x38] sm:$0xff] %v434_v53  ;;  %v289_v56 = vadd.f32 %v696_v6, %v288_v54 }
 0x141   :  { %v290_v57 = vpop.f32.mrf.mxu0  ;;  %v440_v58 = vpop.f32.mrf.mxu1 }
 0x142   :  { %v439_v59 = vadd.f32 %v438_v55, %v289_v56 }
 0x143   :  { %v293_v60 = vpop.f32.mrf.mxu0  ;;  %v443_v61 = vpop.f32.mrf.mxu1 }
 0x144   :  { %490 = vst [vmem:[#allocation7 + $0x40] sm:$0xff] %v439_v59  ;;  %v294_v62 = vadd.f32 %v696_v6, %v293_v60 }
 0x145   :  { %v295_v63 = vpop.f32.mrf.mxu0  ;;  %v445_v1 = vpop.f32.mrf.mxu1 }
 0x146   :  { %v444_v2 = vadd.f32 %v443_v61, %v294_v62 }
 0x147   :  { %v298_v3 = vpop.f32.mrf.mxu0  ;;  %v448_v4 = vpop.f32.mrf.mxu1 }
 0x148   :  { %491 = vst [vmem:[#allocation7 + $0x48] sm:$0xff] %v444_v2  ;;  %v299_v5 = vadd.f32 %v696_v6, %v298_v3 }
 0x149   :  { %v300_v7 = vpop.f32.mrf.mxu0  ;;  %v450_v8 = vpop.f32.mrf.mxu1 }
 0x14a   :  { %v449_v9 = vadd.f32 %v448_v4, %v299_v5 }
 0x14b   :  { %v303_v10 = vpop.f32.mrf.mxu0  ;;  %v453_v11 = vpop.f32.mrf.mxu1 }
 0x14c   :  { %492 = vst [vmem:[#allocation7 + $0x50] sm:$0xff] %v449_v9  ;;  %v304_v0 = vadd.f32 %v696_v6, %v303_v10 }
 0x14d   :  { %v305_v12 = vpop.f32.mrf.mxu0  ;;  %v455_v13 = vpop.f32.mrf.mxu1 }
 0x14e   :  { %v454_v14 = vadd.f32 %v453_v11, %v304_v0 }
 0x14f   :  { %v308_v15 = vpop.f32.mrf.mxu0  ;;  %v458_v16 = vpop.f32.mrf.mxu1 }
 0x150   :  { %493 = vst [vmem:[#allocation7 + $0x58] sm:$0xff] %v454_v14  ;;  %v309_v17 = vadd.f32 %v696_v6, %v308_v15 }
 0x151   :  { %v310_v18 = vpop.f32.mrf.mxu0  ;;  %v460_v19 = vpop.f32.mrf.mxu1 }
 0x152   :  { %v459_v20 = vadd.f32 %v458_v16, %v309_v17 }
 0x153   :  { %v313_v21 = vpop.f32.mrf.mxu0  ;;  %v463_v22 = vpop.f32.mrf.mxu1 }
 0x154   :  { %494 = vst [vmem:[#allocation7 + $0x60] sm:$0xff] %v459_v20  ;;  %v314_v23 = vadd.f32 %v696_v6, %v313_v21 }
 0x155   :  { %v315_v24 = vpop.f32.mrf.mxu0  ;;  %v465_v25 = vpop.f32.mrf.mxu1 }
 0x156   :  { %v464_v26 = vadd.f32 %v463_v22, %v314_v23 }
 0x157   :  { %v318_v27 = vpop.f32.mrf.mxu0  ;;  %v468_v28 = vpop.f32.mrf.mxu1 }
 0x158   :  { %495 = vst [vmem:[#allocation7 + $0x68] sm:$0xff] %v464_v26  ;;  %v319_v29 = vadd.f32 %v696_v6, %v318_v27 }
 0x159   :  { %v320_v30 = vpop.f32.mrf.mxu0  ;;  %v470_v31 = vpop.f32.mrf.mxu1 }
 0x15a   :  { %v469_v32 = vadd.f32 %v468_v28, %v319_v29 }
 0x15b   :  { %v323_v33 = vpop.f32.mrf.mxu0  ;;  %v473_v34 = vpop.f32.mrf.mxu1 }
 0x15c   :  { %496 = vst [vmem:[#allocation7 + $0x70] sm:$0xff] %v469_v32  ;;  %v324_v35 = vadd.f32 %v696_v6, %v323_v33 }
 0x15d   :  { %v325_v36 = vpop.f32.mrf.mxu0  ;;  %v475_v37 = vpop.f32.mrf.mxu1 }
 0x15e   :  { %v474_v38 = vadd.f32 %v473_v34, %v324_v35 }
 0x15f   :  { %v328_v39 = vpop.f32.mrf.mxu0  ;;  %v478_v40 = vpop.f32.mrf.mxu1 }
 0x160   :  { %497 = vst [vmem:[#allocation7 + $0x78] sm:$0xff] %v474_v38  ;;  %v329_v41 = vadd.f32 %v696_v6, %v328_v39 }
 0x161   :  { %v330_v42 = vpop.f32.mrf.mxu0  ;;  %v480_v43 = vpop.f32.mrf.mxu1 }
 0x162   :  { %v479_v44 = vadd.f32 %v478_v40, %v329_v41 }
 0x164   :  { %498 = vst [vmem:[#allocation7 + $0x80] sm:$0x1] %v479_v44 }
 0x165   :  { %577 = shalt.err (!%p574_p0)
}
 0x166   :  { %510 = dma.vmem_to_hbm [thread:$0]  %s505_s26, 2176, %s724_s3, [#allocation4], %s596_s22, %s596_s22, %s597_s23  }
 0x167   :  { %590 = dma.done.wait [#allocation4], 2176  }
 0x168   :  { %591 = vsyncadd [#allocation4], 4294965120 }
 0x169   :  { %514 = vsyncpa [#allocation3], 1 }
 0x16a   :  { %515 = vsyncpa [#allocation6], 1 }
 0x16b   :  { %516 = vsyncpa [#allocation4], 1 }

</bundles_post_ra>
